<compile_context>
chip_gen: v7x
topology: tpu7x:2x2x1
jax: 0.10.0
libtpu: 0.0.40
codegen_flags: <defaults>
</compile_context>

<pallas_src>
import functools

import jax
import jax.numpy as jnp
from jax.experimental import pallas as pl
from jax.experimental.pallas import tpu as pltpu

_LANE = 128        # vreg lane width (last dim)
_SUBLANE = 8       # f32 sublane count (second-to-last dim)
_MAX_BLOCK_B = 1024  # batch-tile cap (1024x128 f32 tile = 512 KiB / buffer)


def _round_up(x, m):
    return (x + m - 1) // m * m


def _mlp_kernel(x_ref, *refs, n_layers: int):
    """Fused MLP on one (block_b, n_input) batch tile.

    refs = (w0, b0, w1, b1, ..., w_{L-1}, b_{L-1}, o_ref).  Weights keep their
    true shapes except the last layer, whose output dim is zero-padded to 128
    so the store below is lane-dense; those padded columns are exactly zero
    (0-weights + 0-bias, no ReLU after the last layer) and are sliced off
    outside the kernel.
    """
    o_ref = refs[-1]
    y = x_ref[...]
    for l in range(n_layers):
        w = refs[2 * l][...]
        b = refs[2 * l + 1][...]          # (1, out) broadcasts over batch rows
        y = jnp.dot(y.astype(w.dtype), w, preferred_element_type=jnp.float32)
        y = y + b.astype(jnp.float32)     # f32 epilogue (v5e VPU has no bf16)
        if l < n_layers - 1:
            y = jnp.maximum(y, 0.0)
    o_ref[...] = y.astype(o_ref.dtype)


def _choose_block_b(n_rows: int) -> int:
    """Pick the batch-tile height: multiple of 8, <= _MAX_BLOCK_B, and >= 2
    grid steps whenever the batch is big enough (so v7x's second TensorCore
    gets work), while keeping batch over-padding to at most one sublane group.
    `n_rows` is the batch already rounded up to a multiple of 8."""
    n_tiles = -(-n_rows // _MAX_BLOCK_B)            # ceil
    if n_rows >= 4 * _SUBLANE:
        n_tiles = max(n_tiles, 2)                   # use both v7x TCs
    block_b = _round_up(-(-n_rows // n_tiles), _SUBLANE)
    return min(block_b, n_rows)


def _mlp_pallas(x, params, *, block_b: int):
    """x: (B_pad, n_input) with B_pad % block_b == 0.  params: list of (W, b)
    with W shaped (fan_in, fan_out); last layer's fan_out padded to x128."""
    B_pad, n_in = x.shape
    n_layers = len(params)
    out_pad = params[-1][0].shape[1]
    grid = (B_pad // block_b,)

    in_specs = [pl.BlockSpec((block_b, n_in), lambda i: (i, 0))]
    flat_wb = []
    for (w, b) in params:
        # Grid-invariant blocks: same (0, 0) every step -> weights/biases stay
        # VMEM-resident across batch tiles (no re-DMA per tile).
        in_specs.append(pl.BlockSpec(w.shape, lambda i: (0, 0)))
        in_specs.append(pl.BlockSpec(b.shape, lambda i: (0, 0)))
        flat_wb.extend((w, b))

    out_specs = pl.BlockSpec((block_b, out_pad), lambda i: (i, 0))

    return pl.pallas_call(
        functools.partial(_mlp_kernel, n_layers=n_layers),
        out_shape=jax.ShapeDtypeStruct((B_pad, out_pad), x.dtype),
        grid_spec=pltpu.PrefetchScalarGridSpec(
            num_scalar_prefetch=0,
            grid=grid,
            in_specs=in_specs,
            out_specs=out_specs,
        ),
        compiler_params=pltpu.CompilerParams(
            # Batch tiles are independent -> shard across v7x's 2 TensorCores.
            dimension_semantics=("parallel",),
        ),
    )(x, *flat_wb)


@functools.partial(jax.jit, static_argnames=("n_output",))
def net_forward(params, x, n_output: int):
    """Forward pass of Net on (B, n_input) f32 inputs. Returns (B, n_output)."""
    B = x.shape[0]
    B8 = _round_up(max(B, 1), _SUBLANE)
    block_b = _choose_block_b(B8)
    B_pad = _round_up(B8, block_b)
    if B_pad != B:
        # Pad only the batch axis, at the true feature width (cheap, and
        # skipped entirely when B already divides the tile).  Padded rows are
        # not meaningful after the bias add; they are sliced off below.
        x = jnp.pad(x, ((0, B_pad - B), (0, 0)))
    out = _mlp_pallas(x, params, block_b=block_b)
    return out[:B, :n_output]


def init_net_params(key, n_input, n_hidden, n_output, hidden_layers=1):
    """Deterministic init mirroring torch.nn.Linear defaults
    (U(-1/sqrt(fan_in), 1/sqrt(fan_in)) for both W and b).  Returns a list of
    (W, b) with W already transposed to (in_features, out_features)."""
    dims = [n_input] + [n_hidden] * hidden_layers + [n_output]
    params = []
    for i in range(len(dims) - 1):
        fan_in, fan_out = dims[i], dims[i + 1]
        key, kw, kb = jax.random.split(key, 3)
        bound = 1.0 / (fan_in ** 0.5)
        w = jax.random.uniform(kw, (fan_in, fan_out), jnp.float32, -bound, bound)
        b = jax.random.uniform(kb, (1, fan_out), jnp.float32, -bound, bound)
        params.append((w, b))
    return params


def prepare_params(params, param_dtype=jnp.float32):
    """One-time kernel-side param prep:
      * only the LAST layer's W/b output dim is zero-padded to a multiple of
        128 (lane-dense final store); all other dims keep their true sizes,
      * W optionally pre-cast once to a low-precision MXU dtype (e.g. bf16)
        to halve weight DMA/VMEM and avoid per-step casts.  Biases stay f32.
    """
    prepped = []
    last = len(params) - 1
    for i, (w, b) in enumerate(params):
        if i == last:
            fi, fo = w.shape
            fo_p = _round_up(fo, _LANE)
            w = jnp.zeros((fi, fo_p), w.dtype).at[:, :fo].set(w)
            b = jnp.zeros((1, fo_p), b.dtype).at[:, :fo].set(b)
        prepped.append((w.astype(param_dtype), b))
    return prepped


if __name__ == "__main__":
    key = jax.random.PRNGKey(0)
    k_params, k_x = jax.random.split(key)

    # Net(n_input=16, n_hidden=32, n_output=4, hidden_layers=2), batch=8.
    n_input, n_hidden, n_output, hidden_layers = 16, 32, 4, 2
    batch = 8

    params = init_net_params(k_params, n_input, n_hidden, n_output, hidden_layers)
    kernel_params = prepare_params(params)   # default f32 -> exact vs reference
    x = jax.random.normal(k_x, (batch, n_input), jnp.float32)

    out = net_forward(kernel_params, x, n_output)
    out = jax.block_until_ready(out)

    # Plain-JAX reference of the same math (unpadded).
    ref = x
    for i, (w, b) in enumerate(params):
        ref = ref @ w + b
        if i < len(params) - 1:
            ref = jnp.maximum(ref, 0.0)

    assert out.shape == (batch, n_output)
    assert jnp.allclose(out, ref, atol=1e-5, rtol=1e-5), float(
        jnp.max(jnp.abs(out - ref)))

    print("KERNEL_OK")
</pallas_src>

<mosaic_0001>
module attributes {stable_mosaic.version = 11 : i64} {
  func.func @_mlp_kernel(%arg0: i32, %arg1: memref<8x16xf32, #tpu.memory_space<vmem>>, %arg2: memref<16x32xf32, #tpu.memory_space<vmem>>, %arg3: memref<1x32xf32, #tpu.memory_space<vmem>>, %arg4: memref<32x32xf32, #tpu.memory_space<vmem>>, %arg5: memref<1x32xf32, #tpu.memory_space<vmem>>, %arg6: memref<32x128xf32, #tpu.memory_space<vmem>>, %arg7: memref<1x128xf32, #tpu.memory_space<vmem>>, %arg8: memref<8x128xf32, #tpu.memory_space<vmem>>) attributes {dimension_semantics = [#tpu.dimension_semantics<parallel>], iteration_bounds = array<i64: 1>, scalar_prefetch = 0 : i64, scratch_operands = 0 : i64, tpu.core_type = #tpu.core_type<tc>, window_params = [{transform_indices = @transform_0, window_bounds = array<i64: 8, 16>}, {pipeline_mode = #tpu.pipeline_mode<synchronous>, transform_indices = @transform_1, window_bounds = array<i64: 16, 32>}, {pipeline_mode = #tpu.pipeline_mode<synchronous>, transform_indices = @transform_2, window_bounds = array<i64: 1, 32>}, {pipeline_mode = #tpu.pipeline_mode<synchronous>, transform_indices = @transform_3, window_bounds = array<i64: 32, 32>}, {pipeline_mode = #tpu.pipeline_mode<synchronous>, transform_indices = @transform_4, window_bounds = array<i64: 1, 32>}, {pipeline_mode = #tpu.pipeline_mode<synchronous>, transform_indices = @transform_5, window_bounds = array<i64: 32, 128>}, {pipeline_mode = #tpu.pipeline_mode<synchronous>, transform_indices = @transform_6, window_bounds = array<i64: 1, 128>}, {transform_indices = @transform_7, window_bounds = array<i64: 8, 128>}]} {
    %c0 = arith.constant 0 : index
    %c0_0 = arith.constant 0 : index
    %0 = vector.load %arg1[%c0, %c0_0] : memref<8x16xf32, #tpu.memory_space<vmem>>, vector<8x16xf32>
    %c0_1 = arith.constant 0 : index
    %c0_2 = arith.constant 0 : index
    %1 = vector.load %arg2[%c0_1, %c0_2] : memref<16x32xf32, #tpu.memory_space<vmem>>, vector<16x32xf32>
    %c0_3 = arith.constant 0 : index
    %c0_4 = arith.constant 0 : index
    %2 = vector.load %arg3[%c0_3, %c0_4] : memref<1x32xf32, #tpu.memory_space<vmem>>, vector<1x32xf32>
    %cst = arith.constant dense<0.000000e+00> : vector<8x32xf32>
    %3 = tpu.matmul %0, %1, %cst {dimension_numbers = #tpu.dot_dimension_numbers<[1], [0], [0], [1], [0, 0, 1, 1], [], []>} : vector<8x16xf32>, vector<16x32xf32>, vector<8x32xf32> -> vector<8x32xf32>
    %4 = vector.broadcast %2 : vector<1x32xf32> to vector<8x32xf32>
    %5 = arith.addf %3, %4 : vector<8x32xf32>
    %cst_5 = arith.constant 0.000000e+00 : f32
    %6 = vector.broadcast %cst_5 : f32 to vector<8x32xf32>
    %7 = arith.maximumf %5, %6 : vector<8x32xf32>
    %c0_6 = arith.constant 0 : index
    %c0_7 = arith.constant 0 : index
    %8 = vector.load %arg4[%c0_6, %c0_7] : memref<32x32xf32, #tpu.memory_space<vmem>>, vector<32x32xf32>
    %c0_8 = arith.constant 0 : index
    %c0_9 = arith.constant 0 : index
    %9 = vector.load %arg5[%c0_8, %c0_9] : memref<1x32xf32, #tpu.memory_space<vmem>>, vector<1x32xf32>
    %cst_10 = arith.constant dense<0.000000e+00> : vector<8x32xf32>
    %10 = tpu.matmul %7, %8, %cst_10 {dimension_numbers = #tpu.dot_dimension_numbers<[1], [0], [0], [1], [0, 0, 1, 1], [], []>} : vector<8x32xf32>, vector<32x32xf32>, vector<8x32xf32> -> vector<8x32xf32>
    %11 = vector.broadcast %9 : vector<1x32xf32> to vector<8x32xf32>
    %12 = arith.addf %10, %11 : vector<8x32xf32>
    %cst_11 = arith.constant 0.000000e+00 : f32
    %13 = vector.broadcast %cst_11 : f32 to vector<8x32xf32>
    %14 = arith.maximumf %12, %13 : vector<8x32xf32>
    %c0_12 = arith.constant 0 : index
    %c0_13 = arith.constant 0 : index
    %15 = vector.load %arg6[%c0_12, %c0_13] : memref<32x128xf32, #tpu.memory_space<vmem>>, vector<32x128xf32>
    %c0_14 = arith.constant 0 : index
    %c0_15 = arith.constant 0 : index
    %16 = vector.load %arg7[%c0_14, %c0_15] : memref<1x128xf32, #tpu.memory_space<vmem>>, vector<1x128xf32>
    %cst_16 = arith.constant dense<0.000000e+00> : vector<8x128xf32>
    %17 = tpu.matmul %14, %15, %cst_16 {dimension_numbers = #tpu.dot_dimension_numbers<[1], [0], [0], [1], [0, 0, 1, 1], [], []>} : vector<8x32xf32>, vector<32x128xf32>, vector<8x128xf32> -> vector<8x128xf32>
    %18 = vector.broadcast %16 : vector<1x128xf32> to vector<8x128xf32>
    %19 = arith.addf %17, %18 : vector<8x128xf32>
    %c0_17 = arith.constant 0 : index
    %c0_18 = arith.constant 0 : index
    %20 = vector.load %arg8[%c0_17, %c0_18] : memref<8x128xf32, #tpu.memory_space<vmem>>, vector<8x128xf32>
    tpu.vector_store %arg8[%c0_17, %c0_18], %19 {strides = array<i32>} : memref<8x128xf32, #tpu.memory_space<vmem>>, vector<8x128xf32>,
    return
  }
  func.func @transform_0(%arg0: i32) -> (i32, i32) {
    %c0_i32 = arith.constant 0 : i32
    %c0_i32_0 = arith.constant 0 : i32
    return %arg0, %c0_i32 : i32, i32
  }
  func.func @transform_1(%arg0: i32) -> (i32, i32) {
    %c0_i32 = arith.constant 0 : i32
    %c0_i32_0 = arith.constant 0 : i32
    %c0_i32_1 = arith.constant 0 : i32
    return %c0_i32, %c0_i32_0 : i32, i32
  }
  func.func @transform_2(%arg0: i32) -> (i32, i32) {
    %c0_i32 = arith.constant 0 : i32
    %c0_i32_0 = arith.constant 0 : i32
    %c0_i32_1 = arith.constant 0 : i32
    return %c0_i32, %c0_i32_0 : i32, i32
  }
  func.func @transform_3(%arg0: i32) -> (i32, i32) {
    %c0_i32 = arith.constant 0 : i32
    %c0_i32_0 = arith.constant 0 : i32
    %c0_i32_1 = arith.constant 0 : i32
    return %c0_i32, %c0_i32_0 : i32, i32
  }
  func.func @transform_4(%arg0: i32) -> (i32, i32) {
    %c0_i32 = arith.constant 0 : i32
    %c0_i32_0 = arith.constant 0 : i32
    %c0_i32_1 = arith.constant 0 : i32
    return %c0_i32, %c0_i32_0 : i32, i32
  }
  func.func @transform_5(%arg0: i32) -> (i32, i32) {
    %c0_i32 = arith.constant 0 : i32
    %c0_i32_0 = arith.constant 0 : i32
    %c0_i32_1 = arith.constant 0 : i32
    return %c0_i32, %c0_i32_0 : i32, i32
  }
  func.func @transform_6(%arg0: i32) -> (i32, i32) {
    %c0_i32 = arith.constant 0 : i32
    %c0_i32_0 = arith.constant 0 : i32
    %c0_i32_1 = arith.constant 0 : i32
    return %c0_i32, %c0_i32_0 : i32, i32
  }
  func.func @transform_7(%arg0: i32) -> (i32, i32) {
    %c0_i32 = arith.constant 0 : i32
    %c0_i32_0 = arith.constant 0 : i32
    return %arg0, %c0_i32 : i32, i32
  }
}

</mosaic_0001>

<bundles_post_ra>
// kernel: net_forward.1
= control target key start
LH: loop header
LB: loop body
LE: loop exit
PB: predicated region body
PF: predicated region fallthrough
CT: control target
= control target key end

     0   :  { %12 = vsyncpa [#allocation3], 0  ;;  %s588_s0 = inlined_call_operand.vmem [shape: f32[8,16], index: 0, kind: input, shape index: {}]   ;;  %s589_s1 = inlined_call_operand.hbm [shape: f32[16,32], index: 1, kind: input, shape index: {}]   ;;  %s590_s2 = inlined_call_operand.vmem [shape: f32[1,32], index: 2, kind: input, shape index: {}]   ;;  %s591_s3 = inlined_call_operand.hbm [shape: f32[32,32], index: 3, kind: input, shape index: {}]   ;;  %s592_s4 = inlined_call_operand.vmem [shape: f32[1,32], index: 4, kind: input, shape index: {}]   ;;  %s593_s5 = inlined_call_operand.hbm [shape: f32[32,128], index: 5, kind: input, shape index: {}]   ;;  %s594_s6 = inlined_call_operand.vmem [shape: f32[1,128], index: 6, kind: input, shape index: {}]   ;;  %s595_s7 = inlined_call_operand.vmem [shape: f32[8,128], index: 7, kind: output, shape index: {}]  }
   0x1   :  { %13 = vsyncpa [#allocation5], 0  ;;  %s470_s24 = smov [#allocation4]   ;;  %s471_s26 = smov [#allocation2]  }
   0x2   :  { %s35_s25 = sshll.u32 %s470_s24, 4  ;;  %s21_s27 = sshll.u32 %s471_s26, 4  ;;  %s36_s25 = int_to_ptr.vmem [resolvable:$true] %s35_s25  ;;  %s518_s27 = int_to_ptr.vmem [resolvable:$true] %s21_s27 }
   0x3   :  { %s400_s30 = scalar_lea.hbm %s591_s3, 512 }
   0x4   :  { %p401_p0 = scmp.ne.s32.totalorder %s591_s3, %s400_s30  ;;  %p404_p1 = scmp.lt.u32.totalorder %s400_s30, %s591_s3 }
   0x6   :  { %p406_p2 = pnand %p404_p1, %p401_p0 }
   0x8   :  { %409 = shalt.err (!%p406_p2)
}
   0x9   :  { %s410_s12 = scalar_lea.vmem %s36_s25, 512  ;;  %p415_p4 = scmp.lt.s32.totalorder %s36_s25, %s36_s25 }
   0xa   :  { %p411_p3 = scmp.ne.s32.totalorder %s36_s25, %s410_s12  ;;  %p416_p5 = scmp.lt.s32.totalorder %s410_s12, %s410_s12 }
   0xc   :  { %p417_p6 = por %p416_p5, %p415_p4 }
   0xe   :  { %p418_p7 = pnand %p417_p6, %p411_p3 }
  0x10   :  { %421 = shalt.err (!%p418_p7)
}
  0x11   :  { %s472_s13 = smov 128   ;;  %s473_s14 = smov 8  }
  0x12   :  { %41 = dma.hbm_to_vmem [thread:$0]  %s591_s3, 512, %s36_s25, [#allocation5], %s472_s13, %s472_s13, %s473_s14  }
  0x13   :  { %s422_s19 = scalar_lea.hbm %s589_s1, 256 }
  0x14   :  { %p423_p8 = scmp.ne.s32.totalorder %s589_s1, %s422_s19  ;;  %p426_p9 = scmp.lt.u32.totalorder %s422_s19, %s589_s1 }
  0x16   :  { %p428_p10 = pnand %p426_p9, %p423_p8 }
  0x18   :  { %431 = shalt.err (!%p428_p10)
}
  0x19   :  { %s432_s24 = scalar_lea.vmem %s518_s27, 256  ;;  %p437_p12 = scmp.lt.s32.totalorder %s518_s27, %s518_s27 }
  0x1a   :  { %p433_p11 = scmp.ne.s32.totalorder %s518_s27, %s432_s24  ;;  %p438_p13 = scmp.lt.s32.totalorder %s432_s24, %s432_s24 }
  0x1c   :  { %p439_p0 = por %p438_p13, %p437_p12 }
  0x1e   :  { %p440_p1 = pnand %p439_p0, %p433_p11 }
  0x20   :  { %443 = shalt.err (!%p440_p1)
}
  0x21   :  { %27 = dma.hbm_to_vmem [thread:$0]  %s589_s1, 256, %s518_s27, [#allocation3], %s472_s13, %s472_s13, %s473_s14  }
  0x22   :  { %s474_s26 = smov [#allocation6]   ;;  %s444_s8 = scalar_lea.hbm %s593_s5, 512 }
  0x23   :  { %s49_s28 = sshll.u32 %s474_s26, 4  ;;  %p445_p2 = scmp.ne.s32.totalorder %s593_s5, %s444_s8  ;;  %s50_s28 = int_to_ptr.vmem [resolvable:$true] %s49_s28 }
  0x24   :  { %p448_p3 = scmp.lt.u32.totalorder %s444_s8, %s593_s5 }
  0x26   :  { %p450_p4 = pnand %p448_p3, %p445_p2 }
  0x28   :  { %453 = shalt.err (!%p450_p4)
}
  0x29   :  { %s454_s15 = scalar_lea.vmem %s50_s28, 512  ;;  %p459_p6 = scmp.lt.s32.totalorder %s50_s28, %s50_s28 }
  0x2a   :  { %p455_p5 = scmp.ne.s32.totalorder %s50_s28, %s454_s15  ;;  %p460_p7 = scmp.lt.s32.totalorder %s454_s15, %s454_s15 }
  0x2c   :  { %p461_p8 = por %p460_p7, %p459_p6 }
  0x2e   :  { %p462_p9 = pnand %p461_p8, %p455_p5 }
  0x30   :  { %465 = shalt.err (!%p462_p9)
}
  0x31   :  { %55 = dma.hbm_to_vmem [thread:$0]  %s593_s5, 512, %s50_s28, [#allocation5], %s472_s13, %s472_s13, %s473_s14  }
  0x32   :  { %466 = dma.done.wait [#allocation3], 256  }
  0x33   :  { %467 = vsyncadd [#allocation3], 4294967040 }
  0x34   :  { %468 = dma.done.wait [#allocation5], 1024  }
  0x35   :  { %469 = vsyncadd [#allocation5], 4294966272  ;;  %v475_v0 = vmov 0.0|0.0   ;;  %vm476_vm0 = vmmov 0   ;;  %v477_v1 = vmov 0.0   ;;  %v68_v2 = vld [vmem:[#allocation2] sm:$0xff] }
  0x36   :  { %377 = vmatprep.subr.bf16.mxu0 %v475_v0  ;;  %352 = vmatprep.mubr.msk.f32.mxu0 %vm476_vm0, %v477_v1  ;;  %v69_v3 = vld [vmem:[#allocation2 + $0x8] sm:$0xff]  ;;  %v152_v5 = vld [vmem:[#allocation4] sm:$0xff]  ;;  %v153_v6 = vld [vmem:[#allocation4 + $0x8] sm:$0xff]  ;;  %vm77_vm1 = vcmask 130048   ;;  %vm163_vm2 = vcmask 261120  }
  0x37   :  { %380 = vmatprep.subr.bf16.mxu1 %v475_v0  ;;  %363 = vmatprep.mubr.msk.f32.mxu1 %vm476_vm0, %v477_v1  ;;  %v378_v4 = vpack.c.bf16 %v69_v3, %v68_v2  ;;  %v381_v7 = vpack.c.bf16 %v153_v6, %v152_v5  ;;  %v67_v8 = vld [vmem:[%s588_s0] sm:$0xff]  ;;  %v155_v10 = vld [vmem:[#allocation4 + $0x18] sm:$0xff]  ;;  %v238_v12 = vld [vmem:[#allocation6] sm:$0xff] }
  0x38   :  { %v154_v9 = vld [vmem:[#allocation4 + $0x10] sm:$0xff]  ;;  %v239_v13 = vld [vmem:[#allocation6 + $0x8] sm:$0xff]  ;;  %v241_v21 = vld [vmem:[#allocation6 + $0x18] sm:$0xff] }
  0x39   :  { %379 = vmatpush3.bf16.msra.mxu0 %v378_v4  ;;  %382 = vmatpush3.bf16.msra.mxu1 %v381_v7  ;;  %v384_v11 = vpack.c.bf16 %v155_v10, %v154_v9  ;;  %v387_v14 = vpack.c.bf16 %v239_v13, %v238_v12  ;;  %v329_v15 = vld [vmem:[%s590_s2] ss:$0 sm:$0xff] }
  0x3a   :  { %386 = vmatprep.subr.bf16.mxu0 %v475_v0  ;;  %383 = vmatprep.subr.bf16.mxu1 %v475_v0  ;;  %v240_v20 = vld [vmem:[#allocation6 + $0x10] sm:$0xff] }
  0x3b   :  { %v390_v22 = vpack.c.bf16 %v241_v21, %v240_v20  ;;  %v331_v23 = vld [vmem:[%s592_s4] ss:$0 sm:$0xff] }
  0x3c   :  { %353 = vmatmul.mubr.msk.f32.vlgmr.msra.gmra.mrb[0].mxu0 %vm77_vm1, %v67_v8  ;;  %v333_v28 = vld [vmem:[%s594_s6] ss:$0 sm:$0xff] }
  0x3d   :  { %374 = vmatprep.mubr.msk.f32.mxu0 %vm476_vm0, %v477_v1  ;;  %385 = vmatpush3.bf16.msra.mxu1 %v384_v11 }
  0x3e   :  { %388 = vmatpush3.bf16.msra.mxu0 %v387_v14 }
  0x3f   :  { %389 = vmatprep.subr.bf16.mxu0 %v475_v0 }
  0x42   :  { %391 = vmatpush3.bf16.msra.mxu0 %v390_v22 }
 0x10f   :  { %v147_v16 = vpop.f32.mrb[0].mxu0 }
 0x110   :  { %v148_v17 = vadd.f32 %v329_v15, %v147_v16  ;;  %v354_v18 = vpop.f32.mrb[1].mxu0 }
 0x112   :  { %v151_v19 = vmax.f32 %v148_v17, 0.0 }
 0x114   :  { %364 = vmatmul.mubr.msk.f32.vlgmr.msra.gmra.mrb[0].mxu1 %vm163_vm2, %v151_v19 }
 0x1e7   :  { %v233_v24 = vpop.f32.mrb[0].mxu1 }
 0x1e8   :  { %v234_v25 = vadd.f32 %v331_v23, %v233_v24  ;;  %v365_v26 = vpop.f32.mrb[1].mxu1 }
 0x1ea   :  { %v237_v27 = vmax.f32 %v234_v25, 0.0 }
 0x1ec   :  { %375 = vmatmul.mubr.msk.f32.vlgmr.msra.gmra.mrb[2].mxu0 %vm163_vm2, %v237_v27 }
 0x2bf   :  { %v318_v29 = vpop.f32.mrb[2].mxu0 }
 0x2c0   :  { %v319_v30 = vadd.f32 %v333_v28, %v318_v29  ;;  %v376_v31 = vpop.f32.mrb[3].mxu0 }
 0x2c2   :  { %322 = vst [vmem:[%s595_s7] sm:$0xff] %v319_v30 }
 0x2c3   :  { %327 = vsyncpa [#allocation3], 1 }
 0x2c4   :  { %328 = vsyncpa [#allocation5], 1 }

</bundles_post_ra>
